<compile_context>
chip_gen: v5e
topology: v5e:2x2
jax: 0.10.0
libtpu: 0.0.40
codegen_flags: <defaults>
</compile_context>

<pallas_src>
import jax
import jax.numpy as jnp
from jax.experimental import pallas as pl
from jax.experimental.pallas import tpu as pltpu

_MAX_TB = 256  # batch tile cap: sized for vreg pressure / pipelining, not VMEM


def _round_up(x, m):
    return ((x + m - 1) // m) * m


def _choose_tb(b):
    # Small batches: single step (per-step overhead outweighs a megacore split).
    if b <= 16:
        return b
    # Otherwise aim for >= 2 grid steps (so "parallel" can shard across TensorCores),
    # 8-aligned for the sublane constraint, capped at _MAX_TB.
    half = -(-b // 2)
    return min(_MAX_TB, _round_up(half, 8))


def _emo_trans_kernel(strat_ref, mat_ref, emb_ref, emb_out_ref, logp_ref):
    # strat_ref : [TB, n_strat]          batch tile of strategy logits (native dtype)
    # mat_ref   : [n_strat, n_emo_out]   row-normalized transition matrix, f32 (VMEM-resident)
    # emb_ref   : [n_emo_out, embed_dim] emotion embedding table, bf16 (VMEM-resident)
    strat = strat_ref[...].astype(jnp.float32)

    # Softmax over strategies (exact divide: accuracy feeds the returned log-probs).
    m0 = jnp.max(strat, axis=-1, keepdims=True)
    e0 = jnp.exp(strat - m0)
    strat_prob = e0 / jnp.sum(e0, axis=-1, keepdims=True)

    # Tiny K = n_strat contraction on the (otherwise idle) MXU, f32 accumulation.
    logits = jnp.dot(strat_prob, mat_ref[...], preferred_element_type=jnp.float32)

    # Analytic log-softmax; probabilities reuse e1 (single exp pass, single log).
    m1 = jnp.max(logits, axis=-1, keepdims=True)
    e1 = jnp.exp(logits - m1)
    l1 = jnp.sum(e1, axis=-1, keepdims=True)
    logp = logits - m1 - jnp.log(l1)
    prob = e1 / l1

    # Embedding mix on the MXU: bf16 operands, f32 accumulation.
    emo_embed = jnp.dot(prob.astype(emb_ref.dtype), emb_ref[...],
                        preferred_element_type=jnp.float32)

    emb_out_ref[...] = emo_embed.astype(emb_out_ref.dtype)
    logp_ref[...] = logp.astype(logp_ref.dtype)


def prepare_emo_trans_params(matrix, emb_table, mxu_dtype=jnp.bfloat16):
    """One-time parameter preprocessing (hoisted out of the per-call path).

    matrix    : [n_strat, n_emo_out]  transition parameter (torch init: ones)
    emb_table : [n_emo_out, embed_dim] emotion embedding weight
    Returns (matrix_norm f32, emb_table cast to mxu_dtype).
    """
    matrix_norm = (matrix / jnp.sum(matrix, axis=-1, keepdims=True)).astype(jnp.float32)
    return matrix_norm, emb_table.astype(mxu_dtype)


def emo_trans_wo_emo(emo_logits, strat_logits, matrix_norm, emb_table):
    """EmoTrans_wo_Emo.forward (eval mode) with pre-processed parameters.

    emo_logits   : [B, n_emo_in]   (only its batch size is used, as in the torch module)
    strat_logits : [B, n_strat]    (any float dtype; cast to f32 in-kernel)
    matrix_norm  : [n_strat, n_emo_out]   from prepare_emo_trans_params
    emb_table    : [n_emo_out, embed_dim] from prepare_emo_trans_params (bf16)
    Returns (emo_embed [B,1,embed_dim] f32, log_emo_out_prob [B, n_emo_out] f32).
    """
    b = emo_logits.shape[0]
    n_strat = strat_logits.shape[-1]
    n_strat_m, n_emo_out = matrix_norm.shape
    assert n_strat_m == n_strat
    embed_dim = emb_table.shape[-1]

    tb = _choose_tb(b)
    grid = (pl.cdiv(b, tb),)

    cost = pl.CostEstimate(
        flops=int(2 * b * n_strat * n_emo_out
                  + 2 * b * n_emo_out * embed_dim
                  + 10 * b * (n_strat + n_emo_out)),
        transcendentals=int(b * (n_strat + n_emo_out + 1)),
        bytes_accessed=int(strat_logits.size * strat_logits.dtype.itemsize
                           + matrix_norm.size * matrix_norm.dtype.itemsize
                           + emb_table.size * emb_table.dtype.itemsize
                           + b * embed_dim * 4 + b * n_emo_out * 4),
    )

    grid_spec = pl.GridSpec(
        grid=grid,
        in_specs=[
            pl.BlockSpec((tb, n_strat), lambda i: (i, 0)),           # batch-tiled, native dtype
            pl.BlockSpec((n_strat, n_emo_out), lambda i: (0, 0)),    # constant -> VMEM-resident
            pl.BlockSpec((n_emo_out, embed_dim), lambda i: (0, 0)),  # constant -> VMEM-resident
        ],
        out_specs=[
            pl.BlockSpec((tb, embed_dim), lambda i: (i, 0)),
            pl.BlockSpec((tb, n_emo_out), lambda i: (i, 0)),
        ],
    )

    emo_embed, logp = pl.pallas_call(
        _emo_trans_kernel,
        grid_spec=grid_spec,
        out_shape=(
            jax.ShapeDtypeStruct((b, embed_dim), jnp.float32),
            jax.ShapeDtypeStruct((b, n_emo_out), jnp.float32),
        ),
        compiler_params=pltpu.CompilerParams(
            dimension_semantics=("parallel",)),
        cost_estimate=cost,
    )(strat_logits, matrix_norm, emb_table)

    # [B,1,E] to match torch's bmm output shape; metadata-only reshape under jit.
    return emo_embed.reshape(b, 1, embed_dim), logp


if __name__ == "__main__":
    # Small, module-consistent shapes.
    B = 2
    n_emo_in = 8
    n_emo_out = 8
    n_strat = 8
    embed_dim = 32

    key = jax.random.PRNGKey(0)
    k1, k2, k3 = jax.random.split(key, 3)

    emo_logits = jax.random.normal(k1, (B, n_emo_in), dtype=jnp.float32)
    strat_logits = jax.random.normal(k2, (B, n_strat), dtype=jnp.float32)

    # torch.nn.init.ones_(self.matrix)
    matrix = jnp.ones((n_strat, n_emo_out), dtype=jnp.float32)
    # nn.Embedding default init ~ N(0,1); deterministic via PRNG.
    emb_table = jax.random.normal(k3, (n_emo_out, embed_dim), dtype=jnp.float32)

    # One-time parameter preprocessing (hoisted out of the forward call).
    matrix_norm, emb_mxu = prepare_emo_trans_params(matrix, emb_table)

    fwd = jax.jit(emo_trans_wo_emo)
    emo_embed, log_emo_out_prob = fwd(emo_logits, strat_logits, matrix_norm, emb_mxu)
    jax.block_until_ready((emo_embed, log_emo_out_prob))

    # Pure-JAX f32 reference check.
    strat_prob = jax.nn.softmax(strat_logits, axis=-1)
    mnorm = matrix / jnp.sum(matrix, axis=-1, keepdims=True)
    p = jax.nn.softmax(strat_prob @ mnorm, axis=-1)
    ref_embed = (p @ emb_table).reshape(B, 1, embed_dim)
    ref_logp = jnp.log(p)

    assert emo_embed.shape == (B, 1, embed_dim)
    assert log_emo_out_prob.shape == (B, n_emo_out)
    # log-probs stay on an all-f32 path -> tight tolerance.
    assert jnp.allclose(log_emo_out_prob, ref_logp, atol=1e-4, rtol=1e-4)
    # emo_embed goes through a bf16-operand MXU matmul (f32 accumulate) -> bf16-level tolerance.
    assert jnp.allclose(emo_embed, ref_embed, atol=2e-2, rtol=2e-2)

    print("KERNEL_OK")
</pallas_src>

<mosaic_0001>
module attributes {stable_mosaic.version = 11 : i64} {
  func.func @_emo_trans_kernel(%arg0: i32, %arg1: memref<2x8xf32, #tpu.memory_space<vmem>>, %arg2: memref<8x8xf32, #tpu.memory_space<vmem>>, %arg3: memref<8x32xbf16, #tpu.memory_space<vmem>>, %arg4: memref<2x32xf32, #tpu.memory_space<vmem>>, %arg5: memref<2x8xf32, #tpu.memory_space<vmem>>) attributes {dimension_semantics = [#tpu.dimension_semantics<parallel>], iteration_bounds = array<i64: 1>, scalar_prefetch = 0 : i64, scratch_operands = 0 : i64, tpu.core_type = #tpu.core_type<tc>, window_params = [{transform_indices = @transform_0, window_bounds = array<i64: 2, 8>}, {pipeline_mode = #tpu.pipeline_mode<synchronous>, transform_indices = @transform_1, window_bounds = array<i64: 8, 8>}, {pipeline_mode = #tpu.pipeline_mode<synchronous>, transform_indices = @transform_2, window_bounds = array<i64: 8, 32>}, {transform_indices = @transform_3, window_bounds = array<i64: 2, 32>}, {transform_indices = @transform_4, window_bounds = array<i64: 2, 8>}]} {
    %c0 = arith.constant 0 : index
    %c0_0 = arith.constant 0 : index
    %0 = vector.load %arg1[%c0, %c0_0] : memref<2x8xf32, #tpu.memory_space<vmem>>, vector<2x8xf32>
    %cst = arith.constant dense<0xFF800000> : vector<2xf32>
    %1 = vector.multi_reduction <maximumf>, %0, %cst [1] : vector<2x8xf32> to vector<2xf32>
    %2 = vector.shape_cast %1 : vector<2xf32> to vector<2x1xf32>
    %3 = vector.broadcast %2 : vector<2x1xf32> to vector<2x8xf32>
    %4 = arith.subf %0, %3 : vector<2x8xf32>
    %5 = math.exp %4 : vector<2x8xf32>
    %cst_1 = arith.constant dense<0.000000e+00> : vector<2xf32>
    %6 = vector.multi_reduction <add>, %5, %cst_1 [1] : vector<2x8xf32> to vector<2xf32>
    %7 = vector.shape_cast %6 : vector<2xf32> to vector<2x1xf32>
    %8 = vector.broadcast %7 : vector<2x1xf32> to vector<2x8xf32>
    %9 = arith.divf %5, %8 : vector<2x8xf32>
    %c0_2 = arith.constant 0 : index
    %c0_3 = arith.constant 0 : index
    %10 = vector.load %arg2[%c0_2, %c0_3] : memref<8x8xf32, #tpu.memory_space<vmem>>, vector<8x8xf32>
    %cst_4 = arith.constant dense<0.000000e+00> : vector<2x8xf32>
    %11 = tpu.matmul %9, %10, %cst_4 {dimension_numbers = #tpu.dot_dimension_numbers<[1], [0], [0], [1], [0, 0, 1, 1], [], []>} : vector<2x8xf32>, vector<8x8xf32>, vector<2x8xf32> -> vector<2x8xf32>
    %cst_5 = arith.constant dense<0xFF800000> : vector<2xf32>
    %12 = vector.multi_reduction <maximumf>, %11, %cst_5 [1] : vector<2x8xf32> to vector<2xf32>
    %13 = vector.shape_cast %12 : vector<2xf32> to vector<2x1xf32>
    %14 = vector.broadcast %13 : vector<2x1xf32> to vector<2x8xf32>
    %15 = arith.subf %11, %14 : vector<2x8xf32>
    %16 = math.exp %15 : vector<2x8xf32>
    %cst_6 = arith.constant dense<0.000000e+00> : vector<2xf32>
    %17 = vector.multi_reduction <add>, %16, %cst_6 [1] : vector<2x8xf32> to vector<2xf32>
    %18 = vector.shape_cast %17 : vector<2xf32> to vector<2x1xf32>
    %19 = vector.broadcast %13 : vector<2x1xf32> to vector<2x8xf32>
    %20 = arith.subf %11, %19 : vector<2x8xf32>
    %21 = math.log %18 : vector<2x1xf32>
    %22 = vector.broadcast %21 : vector<2x1xf32> to vector<2x8xf32>
    %23 = arith.subf %20, %22 : vector<2x8xf32>
    %24 = vector.broadcast %18 : vector<2x1xf32> to vector<2x8xf32>
    %25 = arith.divf %16, %24 : vector<2x8xf32>
    %26 = arith.truncf %25 : vector<2x8xf32> to vector<2x8xbf16>
    %c0_7 = arith.constant 0 : index
    %c0_8 = arith.constant 0 : index
    %27 = vector.load %arg3[%c0_7, %c0_8] : memref<8x32xbf16, #tpu.memory_space<vmem>>, vector<8x32xbf16>
    %cst_9 = arith.constant dense<0.000000e+00> : vector<2x32xf32>
    %28 = tpu.matmul %26, %27, %cst_9 {dimension_numbers = #tpu.dot_dimension_numbers<[1], [0], [0], [1], [0, 0, 1, 1], [], []>} : vector<2x8xbf16>, vector<8x32xbf16>, vector<2x32xf32> -> vector<2x32xf32>
    %c0_10 = arith.constant 0 : index
    %c0_11 = arith.constant 0 : index
    %29 = vector.load %arg4[%c0_10, %c0_11] : memref<2x32xf32, #tpu.memory_space<vmem>>, vector<2x32xf32>
    tpu.vector_store %arg4[%c0_10, %c0_11], %28 {strides = array<i32>} : memref<2x32xf32, #tpu.memory_space<vmem>>, vector<2x32xf32>,
    %c0_12 = arith.constant 0 : index
    %c0_13 = arith.constant 0 : index
    %30 = vector.load %arg5[%c0_12, %c0_13] : memref<2x8xf32, #tpu.memory_space<vmem>>, vector<2x8xf32>
    tpu.vector_store %arg5[%c0_12, %c0_13], %23 {strides = array<i32>} : memref<2x8xf32, #tpu.memory_space<vmem>>, vector<2x8xf32>,
    return
  }
  func.func @transform_0(%arg0: i32) -> (i32, i32) {
    %c0_i32 = arith.constant 0 : i32
    %c0_i32_0 = arith.constant 0 : i32
    return %arg0, %c0_i32 : i32, i32
  }
  func.func @transform_1(%arg0: i32) -> (i32, i32) {
    %c0_i32 = arith.constant 0 : i32
    %c0_i32_0 = arith.constant 0 : i32
    %c0_i32_1 = arith.constant 0 : i32
    return %c0_i32, %c0_i32_0 : i32, i32
  }
  func.func @transform_2(%arg0: i32) -> (i32, i32) {
    %c0_i32 = arith.constant 0 : i32
    %c0_i32_0 = arith.constant 0 : i32
    %c0_i32_1 = arith.constant 0 : i32
    return %c0_i32, %c0_i32_0 : i32, i32
  }
  func.func @transform_3(%arg0: i32) -> (i32, i32) {
    %c0_i32 = arith.constant 0 : i32
    %c0_i32_0 = arith.constant 0 : i32
    return %arg0, %c0_i32 : i32, i32
  }
  func.func @transform_4(%arg0: i32) -> (i32, i32) {
    %c0_i32 = arith.constant 0 : i32
    %c0_i32_0 = arith.constant 0 : i32
    return %arg0, %c0_i32 : i32, i32
  }
}

</mosaic_0001>

<bundles_post_ra>
// kernel: emo_trans_wo_emo.1
= control target key start
LH: loop header
LB: loop body
LE: loop exit
PB: predicated region body
PF: predicated region fallthrough
CT: control target
= control target key end

     0   :  { %10 = vsyncpa [#allocation3], 0  ;;  %s394_s0 = inlined_call_operand.hbm [shape: f32[2,8], index: 0, kind: input, shape index: {}]   ;;  %s395_s1 = inlined_call_operand.hbm [shape: f32[8,8], index: 1, kind: input, shape index: {}]   ;;  %s396_s2 = inlined_call_operand.hbm [shape: bf16[8,32], index: 2, kind: input, shape index: {}]   ;;  %s397_s3 = inlined_call_operand.hbm [shape: f32[2,32], index: 3, kind: output, shape index: {0}]   ;;  %s398_s4 = inlined_call_operand.hbm [shape: f32[2,8], index: 4, kind: output, shape index: {1}]  }
   0x1   :  { %11 = vsyncpa [#allocation6], 0 }
   0x2   :  { %12 = vsyncpa [#allocation4], 0  ;;  %s30_s17 = sshll.u32 %s395_s1, 4  ;;  %s31_s17 = int_to_ptr.hbm [resolvable:$true] %s30_s17 }
   0x3   :  { %13 = vsyncpa [#allocation10], 0  ;;  %s342_s18 = smov [#allocation5]   ;;  %s19_s22 = sshll.u32 %s394_s0, 4  ;;  %s20_s22 = int_to_ptr.hbm [resolvable:$true] %s19_s22 }
   0x4   :  { %s32_s19 = sshll.u32 %s342_s18, 4  ;;  %s343_s23 = smov [#allocation2]   ;;  %s33_s19 = int_to_ptr.vmem [resolvable:$true] %s32_s19 }
   0x5   :  { %35 = dma.hbm_to_vmem [thread:$0]  %s31_s17, 128, %s33_s19, [#allocation6]  }
   0x6   :  { %s21_s24 = sshll.u32 %s343_s23, 4  ;;  %s41_s27 = sshll.u32 %s396_s2, 4  ;;  %s22_s24 = int_to_ptr.vmem [resolvable:$true] %s21_s24  ;;  %s42_s27 = int_to_ptr.hbm [resolvable:$true] %s41_s27 }
   0x7   :  { %24 = dma.hbm_to_vmem [thread:$0]  %s20_s22, 32, %s22_s24, [#allocation3]  }
   0x8   :  { %s344_s1 = smov [#allocation7]  }
   0x9   :  { %s43_s28 = sshll.u32 %s344_s1, 4  ;;  %s44_s28 = int_to_ptr.vmem [resolvable:$true] %s43_s28 }
   0xa   :  { %46 = dma.hbm_to_vmem [thread:$0]  %s42_s27, 64, %s44_s28, [#allocation6]  }
   0xb   :  { %334 = dma.done.wait [#allocation3], 32  }
   0xc   :  { %335 = vsyncadd [#allocation3], 4294967264 }
   0xd   :  { %336 = dma.done.wait [#allocation6], 192  }
   0xe   :  { %337 = vsyncadd [#allocation6], 4294967104  ;;  %vm61_vm0 = vcmask 58368   ;;  %v60_v0 = vld [vmem:[#allocation2] sm:$0x3]  ;;  %v86_v7 = vld [vmem:[#allocation5] sm:$0xff] }
   0xf   :  { %v62_v1 = vsel %vm61_vm0, %v60_v0, -inf  ;;  %106 = vmatpush.msra.mxu0 %v86_v7  ;;  %vm87_vm5 = vcmask 64512   ;;  %v139_v27 = vld [vmem:[#allocation7] sm:$0xf]  ;;  %vm143_vm6 = vcmask 1043456   ;;  %s345_s0 = smov [#allocation9]  }
  0x10   :  { %63 = vmax.xlane.f32.xlu0 %v62_v1  ;;  %v145_v28 = vsel %vm143_vm6, %v139_v27, 0  ;;  %s179_s2 = sshll.u32 %s345_s0, 4  ;;  %s181_s5 = sshll.u32 %s398_s4, 4  ;;  %vm160_vm11 = vcmask 254976   ;;  %s180_s2 = int_to_ptr.vmem [resolvable:$true] %s179_s2  ;;  %s182_s5 = int_to_ptr.hbm [resolvable:$true] %s181_s5 }
  0x11   :  { %154 = vmatpush.bf16.msra.mxu1 %v145_v28  ;;  %s346_s6 = smov [#allocation8]   ;;  %s170_s10 = sshll.u32 %s397_s3, 4  ;;  %s171_s10 = int_to_ptr.hbm [resolvable:$true] %s170_s10 }
  0x12   :  { %s168_s7 = sshll.u32 %s346_s6, 4  ;;  %s169_s7 = int_to_ptr.vmem [resolvable:$true] %s168_s7 }
  0x83   :  { %v64_v2 = vpop.xlane.xlu0 %63 }
  0x84   :  { %v65_v3 = vsub.f32 %v60_v0, %v64_v2 }
  0x86   :  { %v66_v4 = vmul.f32 1.442695, %v65_v3 }
  0x88   :  { %204 = vpow2.f32 %v66_v4 }
  0x8e   :  { %v205_v5 = vpop.eup %204 }
  0x8f   :  { %v68_v6 = vsel %vm61_vm0, %v205_v5, 0.0 }
  0x90   :  { %69 = vadd.xlane.f32.xlu0 %v68_v6 }
 0x103   :  { %v70_v8 = vpop.xlane.xlu0 %69 }
 0x104   :  { %206 = vrcp.f32 %v70_v8  ;;  %v82_v12 = vand.u32 2147483648, %v70_v8  ;;  %v80_v14 = vand.u32 2147483647, %v70_v8  ;;  %vm76_vm2 = vweird.f32 %v70_v8 }
 0x106   :  { %v83_v16 = vor.u32 1.1754944e-38, %v82_v12  ;;  %vm81_vm4 = vcmp.eq.f32.partialorder %v80_v14, 8.507059e+37 }
 0x10a   :  { %v207_v9 = vpop.eup %206 }
 0x10b   :  { %v72_v10 = vmul.f32 %v207_v9, %v70_v8  ;;  %vm77_vm1 = vweird.f32 %v207_v9 }
 0x10c   :  { %vm78_vm3 = vmor %vm76_vm2, %vm77_vm1 }
 0x10d   :  { %v73_v11 = vsub.f32 1.0, %v72_v10 }
 0x10f   :  { %v74_v13 = vmul.f32 %v207_v9, %v73_v11 }
 0x111   :  { %v75_v15 = vadd.f32 %v207_v9, %v74_v13 }
 0x113   :  { %v79_v17 = vsel %vm78_vm3, %v207_v9, %v75_v15 }
 0x114   :  { %v84_v18 = vsel %vm81_vm4, %v83_v16, %v79_v17 }
 0x115   :  { %v85_v19 = vmul.f32 %v205_v5, %v84_v18 }
 0x117   :  { %197 = vmatmul.msk.f32.vlgmr.msra.gmra.mxu0 %vm87_vm5, %v85_v19 }
 0x194   :  { %v108_v20 = vpop.f32.mrf.mxu0 }
 0x195   :  { %v111_v21 = vsel %vm61_vm0, %v108_v20, -inf }
 0x196   :  { %112 = vmax.xlane.f32.xlu1 %v111_v21 }
 0x209   :  { %v113_v22 = vpop.xlane.xlu1 %112 }
 0x20a   :  { %v114_v23 = vsub.f32 %v108_v20, %v113_v22 }
 0x20c   :  { %v115_v24 = vmul.f32 1.442695, %v114_v23 }
 0x20e   :  { %208 = vpow2.f32 %v115_v24 }
 0x214   :  { %v209_v25 = vpop.eup %208 }
 0x215   :  { %v117_v26 = vsel %vm61_vm0, %v209_v25, 0.0 }
 0x216   :  { %118 = vadd.xlane.f32.xlu1 %v117_v26 }
 0x289   :  { %v119_v29 = vpop.xlane.xlu1 %118 }
 0x28a   :  { %210 = vlog2.f32 %v119_v29  ;;  %v134_v36 = vand.u32 2147483648, %v119_v29  ;;  %v132_v38 = vand.u32 2147483647, %v119_v29  ;;  %vm128_vm8 = vweird.f32 %v119_v29 }
 0x28b   :  { %212 = vrcp.f32 %v119_v29 }
 0x28c   :  { %v135_v40 = vor.u32 1.1754944e-38, %v134_v36  ;;  %vm133_vm10 = vcmp.eq.f32.partialorder %v132_v38, 8.507059e+37 }
 0x290   :  { %v211_v30 = vpop.eup %210 }
 0x291   :  { %v213_v31 = vpop.eup %212  ;;  %v121_v32 = vmul.f32 0.6931472, %v211_v30 }
 0x292   :  { %v124_v33 = vmul.f32 %v213_v31, %v119_v29  ;;  %vm129_vm7 = vweird.f32 %v213_v31 }
 0x293   :  { %v122_v34 = vsub.f32 %v114_v23, %v121_v32  ;;  %vm130_vm9 = vmor %vm128_vm8, %vm129_vm7 }
 0x294   :  { %v125_v35 = vsub.f32 1.0, %v124_v33 }
 0x295   :  { %162 = vst.msk [vmem:[#allocation9] sm:$0x3] %vm61_vm0, %v122_v34 }
 0x296   :  { %v126_v37 = vmul.f32 %v213_v31, %v125_v35  ;;  %184 = dma.vmem_to_hbm [thread:$0]  %s180_s2, 32, %s182_s5, [#allocation10]  }
 0x298   :  { %v127_v39 = vadd.f32 %v213_v31, %v126_v37 }
 0x29a   :  { %v131_v41 = vsel %vm130_vm9, %v213_v31, %v127_v39 }
 0x29b   :  { %v136_v42 = vsel %vm133_vm10, %v135_v40, %v131_v41 }
 0x29c   :  { %v137_v43 = vmul.f32 %v209_v25, %v136_v42 }
 0x29e   :  { %v138_v44 = vpack.c.bf16 %v137_v43, %v137_v43 }
 0x2a0   :  { %198 = vmatmul.msk.bf16.vlgmr.msra.gmra.mxu1 %vm87_vm5, %v138_v44 }
 0x31d   :  { %v156_v45 = vpop.f32.mrf.mxu1 }
 0x31e   :  { %161 = vst.msk [vmem:[#allocation8] sm:$0x3] %vm160_vm11, %v156_v45 }
 0x31f   :  { %173 = dma.vmem_to_hbm [thread:$0]  %s169_s7, 32, %s171_s10, [#allocation4]  }
 0x325   :  { %v158_v46 = vpop.f32.mrf.mxu1 }
 0x326   :  { %338 = dma.done.wait [#allocation4], 32  }
 0x327   :  { %339 = vsyncadd [#allocation4], 4294967264 }
 0x328   :  { %340 = dma.done.wait [#allocation10], 32  }
 0x329   :  { %341 = vsyncadd [#allocation10], 4294967264 }
 0x32a   :  { %193 = vsyncpa [#allocation3], 1 }
 0x32b   :  { %194 = vsyncpa [#allocation6], 1 }
 0x32c   :  { %195 = vsyncpa [#allocation4], 1 }
 0x32d   :  { %196 = vsyncpa [#allocation10], 1 }

</bundles_post_ra>
